<compile_context>
chip_gen: v5e
topology: v5e:2x2
jax: 0.10.0
libtpu: 0.0.40
codegen_flags: <defaults>
</compile_context>

<pallas_src>
import functools

import jax
import jax.numpy as jnp
from jax.experimental import pallas as pl
from jax.experimental.pallas import tpu as pltpu


def _largest_aligned_divisor(n, align=128, cap=4096):
    """Largest divisor of n that is a multiple of `align` and <= cap (0 if none)."""
    m = min(cap, n)
    m -= m % align
    for cand in range(m, 0, -align):
        if n % cand == 0:
            return cand
    return 0


# ----------------------------------------------------------------------------
# time-strided-conv: Conv3d(k=(5,1,1), stride=(alpha,1,1)) + BN + ReLU + concat,
# fused into a single kernel that writes the final (B, Cs+Co, T*HW) buffer.
# ----------------------------------------------------------------------------
def _conv_fuse_kernel(slow_ref, fast_ref, w_ref, shift_ref, out_ref, *,
                      alpha, kt, t_out, cs, unroll):
    # slow_ref  : (1, Cs, L)        L = T_out*HW (lane-dense flat layout)
    # fast_ref  : (1, Cf, Tf, HW)
    # w_ref     : (Co, KT*Cf)       bf16, BN scale folded in, k-major columns
    # shift_ref : (Co, 1)           f32 folded BN shift (+ conv bias)
    # out_ref   : (1, Cs+Co, L)     final fused output (slow | conv)
    co = w_ref.shape[0]
    hw = fast_ref.shape[3]

    # Slow pathway passthrough: one dense (Cs, L) copy into channels [0, Cs).
    out_ref[0, :cs, :] = slow_ref[0]

    w = w_ref[...]                                               # hoisted
    shift_b = jnp.broadcast_to(shift_ref[...], (co, hw))         # hoisted broadcast

    def emit(t):
        # Build the (KT*Cf, HW) RHS for output frame t (k-major row order) and
        # run a single MXU contraction instead of KT tiny K=Cf dots.
        taps = [fast_ref[0, :, t * alpha + k, :] for k in range(kt)]  # KT x (Cf, HW)
        rhs = jnp.concatenate(taps, axis=0).astype(w.dtype)           # bf16 MXU input
        acc = jnp.dot(w, rhs, preferred_element_type=jnp.float32)     # (Co, HW) f32
        y = jnp.maximum(acc + shift_b, 0.0)                           # BN shift + ReLU
        out_ref[0, pl.ds(cs, co), pl.ds(t * hw, hw)] = y.astype(out_ref.dtype)

    if unroll:                      # small T_out: static unroll (LLO visibility)
        for t in range(t_out):
            emit(t)
    else:                           # large T_out: bound live ranges / vreg pressure
        @pl.loop(0, t_out)
        def _(t):
            emit(t)


def time_strided_conv_fuse(slow_x, fast_x, w_mat, shift, alpha):
    alpha = int(alpha)
    B, Cs, Ts, H, W = slow_x.shape
    _, Cf, Tf, _, _ = fast_x.shape
    Co = w_mat.shape[0]
    KT = w_mat.shape[1] // Cf
    assert w_mat.shape[1] == KT * Cf
    T_out = (Tf - KT) // alpha + 1
    assert T_out == Ts, "concat along channels requires matching time extents"
    HW = H * W
    L = T_out * HW                                   # fold T into lanes (dense stores)

    slow2 = slow_x.reshape(B, Cs, L)                 # free reshape
    fast2 = fast_x.reshape(B, Cf, Tf, HW)            # free reshape

    # VMEM budget from actual block bytes (double buffered), capped for v7x (64MiB/TC).
    itemsize = slow_x.dtype.itemsize
    blk_bytes = ((Cs + (Cs + Co)) * L) * itemsize + Cf * Tf * HW * fast_x.dtype.itemsize
    vmem_limit = int(min(max(2 * blk_bytes + (2 << 20), 16 << 20), 64 << 20))

    kernel = functools.partial(_conv_fuse_kernel, alpha=alpha, kt=KT, t_out=T_out,
                               cs=Cs, unroll=(T_out <= 8))
    # TODO(synk): for very large T*HW*C (whole per-batch slab > ~20 MiB) a
    # spatial-blocking variant would be needed; typical SlowFast fusion stages fit.
    out = pl.pallas_call(
        kernel,
        out_shape=jax.ShapeDtypeStruct((B, Cs + Co, L), slow_x.dtype),
        grid=(B,),
        in_specs=[
            pl.BlockSpec((1, Cs, L), lambda b: (b, 0, 0)),
            pl.BlockSpec((1, Cf, Tf, HW), lambda b: (b, 0, 0, 0)),
            pl.BlockSpec((Co, KT * Cf), lambda b: (0, 0)),
            pl.BlockSpec((Co, 1), lambda b: (0, 0)),
        ],
        out_specs=pl.BlockSpec((1, Cs + Co, L), lambda b: (b, 0, 0)),
        compiler_params=pltpu.CompilerParams(
            dimension_semantics=("parallel",),       # batch steps split across TCs (v7x)
            vmem_limit_bytes=vmem_limit),
    )(slow2, fast2, w_mat, shift)

    return out.reshape(B, Cs + Co, T_out, H, W)      # free reshape (no data movement)


# ----------------------------------------------------------------------------
# time-to-channel: reshape fast pathway into channels and add (flat tiled add)
# ----------------------------------------------------------------------------
def _add_kernel(a_ref, b_ref, o_ref):
    o_ref[...] = a_ref[...] + b_ref[...]


def time_to_channel_fuse(slow_x, fast_x):
    b, c, t, h, w = slow_x.shape
    assert fast_x.size == slow_x.size, "torch .view requires equal element counts"
    n = int(slow_x.size)
    # torch's .view + add is an exact flat-order elementwise add: pick the largest
    # 128-multiple divisor of n as the lane width (keeps every store lane-dense).
    lane = _largest_aligned_divisor(n)
    if lane == 0:
        # TODO(synk): no 128-multiple divisor; falls back to masked (sub-128) stores.
        lane = h * w
    rows = n // lane
    itemsize = slow_x.dtype.itemsize
    row_cap = max(1, (2 << 20) // (lane * itemsize))   # ~2 MiB blocks
    if row_cap >= rows:
        row_blk = rows
    else:
        row_blk = max(8, (row_cap // 8) * 8)
    a2 = slow_x.reshape(rows, lane)
    b2 = fast_x.reshape(rows, lane)
    out = pl.pallas_call(
        _add_kernel,
        out_shape=jax.ShapeDtypeStruct((rows, lane), slow_x.dtype),
        grid=(pl.cdiv(rows, row_blk),),
        in_specs=[pl.BlockSpec((row_blk, lane), lambda i: (i, 0)),
                  pl.BlockSpec((row_blk, lane), lambda i: (i, 0))],
        out_specs=pl.BlockSpec((row_blk, lane), lambda i: (i, 0)),
        compiler_params=pltpu.CompilerParams(dimension_semantics=("parallel",)),
    )(a2, b2)
    return out.reshape(b, c, t, h, w)


# ----------------------------------------------------------------------------
# time-strided-sample: gather fast frames ::alpha straight from HBM (manual DMA)
# and concat along channels; no XLA strided-slice temporary, no extra frame reads.
# ----------------------------------------------------------------------------
def _sample_fuse_kernel(slow_ref, fast_hbm, out_ref, fbuf, sems, *, alpha, t_out, cs):
    # slow_ref : (1, Cs, T, HW)   VMEM block
    # fast_hbm : (B, Cf, Tf, HW)  raw HBM ref (memory_space=pl.ANY)
    # out_ref  : (1, Cs+Cf, T, HW)
    # fbuf     : VMEM (Cf, T, HW) scratch; sems: DMA semaphores (T,)
    b = pl.program_id(0)
    out_ref[0, :cs, :, :] = slow_ref[0]              # slow passthrough
    for t in range(t_out):                           # start all frame gathers
        pltpu.make_async_copy(fast_hbm.at[b, :, pl.ds(t * alpha, 1), :],
                              fbuf.at[:, pl.ds(t, 1), :],
                              sems.at[t]).start()
    for t in range(t_out):                           # wait, then one dense store
        pltpu.make_async_copy(fast_hbm.at[b, :, pl.ds(t * alpha, 1), :],
                              fbuf.at[:, pl.ds(t, 1), :],
                              sems.at[t]).wait()
    out_ref[0, cs:, :, :] = fbuf[...]


def time_strided_sample_fuse(slow_x, fast_x, alpha):
    alpha = int(alpha)
    B, Cs, Ts, H, W = slow_x.shape
    _, Cf, Tf, _, _ = fast_x.shape
    n_sel = -(-Tf // alpha)
    assert n_sel == Ts, "torch.cat requires matching time extents"
    HW = H * W
    slow4 = slow_x.reshape(B, Cs, Ts, HW)            # free reshapes, HW on lanes
    fast4 = fast_x.reshape(B, Cf, Tf, HW)
    kernel = functools.partial(_sample_fuse_kernel, alpha=alpha, t_out=Ts, cs=Cs)
    out = pl.pallas_call(
        kernel,
        out_shape=jax.ShapeDtypeStruct((B, Cs + Cf, Ts, HW), slow_x.dtype),
        grid=(B,),
        in_specs=[pl.BlockSpec((1, Cs, Ts, HW), lambda b: (b, 0, 0, 0)),
                  pl.BlockSpec(memory_space=pl.ANY)],
        out_specs=pl.BlockSpec((1, Cs + Cf, Ts, HW), lambda b: (b, 0, 0, 0)),
        scratch_shapes=[pltpu.VMEM((Cf, Ts, HW), fast_x.dtype),
                        pltpu.SemaphoreType.DMA((Ts,))],
        compiler_params=pltpu.CompilerParams(dimension_semantics=("arbitrary",)),
    )(slow4, fast4)
    return out.reshape(B, Cs + Cf, Ts, H, W)


# ----------------------------------------------------------------------------
# _FusionFastSlow wrapper
# ----------------------------------------------------------------------------
class FusionFastSlowPallas:
    def __init__(self, fusion_mode, in_features, alpha, beta, eps=1e-5):
        self.fusion_mode = fusion_mode
        self.alpha = alpha
        self.beta = beta
        if fusion_mode == "time-strided-conv":
            cf = int(in_features * beta)
            co = cf * 2
            kt = 5
            ks = jax.random.split(jax.random.PRNGKey(0), 6)
            # Raw weights stored in PyTorch Conv3d layout minus the (1,1) spatial
            # taps: (Co, Cf, KT)  (== torch weight[..., 0, 0]).
            self.w = 0.1 * jax.random.normal(ks[0], (co, cf, kt), jnp.float32)
            self.b = 0.1 * jax.random.normal(ks[1], (co,), jnp.float32)
            self.gamma = 1.0 + 0.1 * jax.random.normal(ks[2], (co,), jnp.float32)
            self.beta_bn = 0.1 * jax.random.normal(ks[3], (co,), jnp.float32)
            self.mean = 0.1 * jax.random.normal(ks[4], (co,), jnp.float32)
            self.var = 1.0 + 0.1 * jnp.abs(jax.random.normal(ks[5], (co,), jnp.float32))
            # Fold inference BatchNorm into the kernel weights/shift:
            #   y = scale*(W.x + b - mean) + beta,  scale = gamma / sqrt(var + eps)
            scale = self.gamma / jnp.sqrt(self.var + eps)               # (Co,)
            wmat = jnp.transpose(self.w, (0, 2, 1)).reshape(co, kt * cf)  # k-major cols
            self.w_mat = (wmat * scale[:, None]).astype(jnp.bfloat16)   # bf16 MXU input
            self.shift = (self.beta_bn + (self.b - self.mean) * scale
                          ).reshape(co, 1).astype(jnp.float32)
        elif fusion_mode not in ("time-to-channel", "time-strided-sample"):
            raise ValueError(f"Invalid fusion mode {fusion_mode}")

    def __call__(self, slow_x, fast_x):
        if self.fusion_mode == "time-to-channel":
            return time_to_channel_fuse(slow_x, fast_x)
        if self.fusion_mode == "time-strided-sample":
            return time_strided_sample_fuse(slow_x, fast_x, int(self.alpha))
        return time_strided_conv_fuse(slow_x, fast_x, self.w_mat, self.shift,
                                      int(self.alpha))


# ----------------------------------------------------------------------------
# Pure-JAX references for verification
# ----------------------------------------------------------------------------
def _ref_conv_fuse(slow_x, fast_x, w, b, gamma, beta_bn, mean, var, alpha, eps=1e-5):
    B, Cf, Tf, H, W = fast_x.shape
    Co, _, KT = w.shape
    Ts = (Tf - KT) // alpha + 1
    wins = jnp.stack([fast_x[:, :, t * alpha:t * alpha + KT] for t in range(Ts)],
                     axis=1)                                   # (B, Ts, Cf, KT, H, W)
    conv = jnp.einsum("btckhw,ock->bothw", wins, w) + b[None, :, None, None, None]
    y = gamma[None, :, None, None, None] * (conv - mean[None, :, None, None, None]) \
        / jnp.sqrt(var[None, :, None, None, None] + eps) + beta_bn[None, :, None, None, None]
    y = jnp.maximum(y, 0.0)
    return jnp.concatenate([slow_x, y], axis=1)


if __name__ == "__main__":
    key = jax.random.PRNGKey(0)

    # ---------------- main demo: time-strided-conv ----------------
    B, Cs, Ts, H, W = 2, 16, 4, 8, 8
    alpha, beta = 5, 0.5          # kernel_t=5, stride=alpha => Tf = alpha*Ts works
    Cf = int(Cs * beta)           # 8
    Tf = alpha * Ts               # 20
    k1, k2, k3, k4 = jax.random.split(key, 4)
    slow_x = jax.random.normal(k1, (B, Cs, Ts, H, W), jnp.float32)
    fast_x = jax.random.normal(k2, (B, Cf, Tf, H, W), jnp.float32)

    fuser = FusionFastSlowPallas("time-strided-conv", Cs, alpha, beta)
    out = fuser(slow_x, fast_x)
    jax.block_until_ready(out)
    ref = _ref_conv_fuse(slow_x, fast_x, fuser.w, fuser.b, fuser.gamma,
                         fuser.beta_bn, fuser.mean, fuser.var, alpha)
    assert out.shape == (B, Cs + 2 * Cf, Ts, H, W), out.shape
    # bf16 MXU path (f32 accumulation) -> loosened tolerance vs the f32 reference.
    assert jnp.allclose(out, ref, rtol=2e-2, atol=2e-2)

    # ---------------- time-to-channel ----------------
    a2, b2 = 4, 0.25              # alpha*beta*c == c so the torch add is valid
    fast_ttc = jax.random.normal(k3, (B, int(b2 * Cs), a2 * Ts, H, W), jnp.float32)
    fuser_ttc = FusionFastSlowPallas("time-to-channel", Cs, a2, b2)
    out_ttc = fuser_ttc(slow_x, fast_ttc)
    jax.block_until_ready(out_ttc)
    ref_ttc = slow_x + fast_ttc.reshape(B, Cs, Ts, H, W)
    assert jnp.allclose(out_ttc, ref_ttc, rtol=1e-5, atol=1e-5)

    # ---------------- time-strided-sample ----------------
    a3 = 4
    fast_tss = jax.random.normal(k4, (B, Cf, a3 * Ts, H, W), jnp.float32)
    fuser_tss = FusionFastSlowPallas("time-strided-sample", Cs, a3, beta)
    out_tss = fuser_tss(slow_x, fast_tss)
    jax.block_until_ready(out_tss)
    ref_tss = jnp.concatenate([slow_x, fast_tss[:, :, ::a3]], axis=1)
    assert jnp.allclose(out_tss, ref_tss, rtol=1e-5, atol=1e-5)

    print("KERNEL_OK")
</pallas_src>

<mosaic_0001>
module attributes {stable_mosaic.version = 11 : i64} {
  func.func @_conv_fuse_kernel(%arg0: i32, %arg1: memref<1x16x256xf32, #tpu.memory_space<vmem>>, %arg2: memref<1x8x20x64xf32, #tpu.memory_space<vmem>>, %arg3: memref<16x40xbf16, #tpu.memory_space<vmem>>, %arg4: memref<16x1xf32, #tpu.memory_space<vmem>>, %arg5: memref<1x32x256xf32, #tpu.memory_space<vmem>>) attributes {dimension_semantics = [#tpu.dimension_semantics<parallel>], iteration_bounds = array<i64: 2>, scalar_prefetch = 0 : i64, scratch_operands = 0 : i64, tpu.core_type = #tpu.core_type<tc>, window_params = [{transform_indices = @transform_0, window_bounds = array<i64: 1, 16, 256>}, {transform_indices = @transform_1, window_bounds = array<i64: 1, 8, 20, 64>}, {pipeline_mode = #tpu.pipeline_mode<synchronous>, transform_indices = @transform_2, window_bounds = array<i64: 16, 40>}, {pipeline_mode = #tpu.pipeline_mode<synchronous>, transform_indices = @transform_3, window_bounds = array<i64: 16, 1>}, {transform_indices = @transform_4, window_bounds = array<i64: 1, 32, 256>}]} {
    %c0 = arith.constant 0 : index
    %c0_0 = arith.constant 0 : index
    %c0_1 = arith.constant 0 : index
    %0 = vector.load %arg1[%c0, %c0_0, %c0_1] : memref<1x16x256xf32, #tpu.memory_space<vmem>>, vector<1x16x256xf32>
    %1 = vector.shape_cast %0 : vector<1x16x256xf32> to vector<16x256xf32>
    %c0_2 = arith.constant 0 : index
    %c0_3 = arith.constant 0 : index
    %c0_4 = arith.constant 0 : index
    %2 = vector.load %arg5[%c0_2, %c0_3, %c0_4] : memref<1x32x256xf32, #tpu.memory_space<vmem>>, vector<1x16x256xf32>
    %3 = vector.shape_cast %2 : vector<1x16x256xf32> to vector<16x256xf32>
    %4 = vector.shape_cast %1 : vector<16x256xf32> to vector<1x16x256xf32>
    tpu.vector_store %arg5[%c0_2, %c0_3, %c0_4], %4 {strides = array<i32>} : memref<1x32x256xf32, #tpu.memory_space<vmem>>, vector<1x16x256xf32>,
    %c0_5 = arith.constant 0 : index
    %c0_6 = arith.constant 0 : index
    %5 = vector.load %arg3[%c0_5, %c0_6] : memref<16x40xbf16, #tpu.memory_space<vmem>>, vector<16x40xbf16>
    %c0_7 = arith.constant 0 : index
    %c0_8 = arith.constant 0 : index
    %6 = vector.load %arg4[%c0_7, %c0_8] : memref<16x1xf32, #tpu.memory_space<vmem>>, vector<16x1xf32>
    %7 = vector.shape_cast %6 : vector<16x1xf32> to vector<16x1xf32>
    %8 = vector.broadcast %7 : vector<16x1xf32> to vector<16x64xf32>
    %c0_9 = arith.constant 0 : index
    %c0_10 = arith.constant 0 : index
    %c0_11 = arith.constant 0 : index
    %c0_12 = arith.constant 0 : index
    %9 = vector.load %arg2[%c0_9, %c0_10, %c0_11, %c0_12] : memref<1x8x20x64xf32, #tpu.memory_space<vmem>>, vector<1x8x1x64xf32>
    %10 = vector.shape_cast %9 : vector<1x8x1x64xf32> to vector<8x64xf32>
    %c0_13 = arith.constant 0 : index
    %c0_14 = arith.constant 0 : index
    %c1 = arith.constant 1 : index
    %c0_15 = arith.constant 0 : index
    %11 = vector.load %arg2[%c0_13, %c0_14, %c1, %c0_15] : memref<1x8x20x64xf32, #tpu.memory_space<vmem>>, vector<1x8x1x64xf32>
    %12 = vector.shape_cast %11 : vector<1x8x1x64xf32> to vector<8x64xf32>
    %c0_16 = arith.constant 0 : index
    %c0_17 = arith.constant 0 : index
    %c2 = arith.constant 2 : index
    %c0_18 = arith.constant 0 : index
    %13 = vector.load %arg2[%c0_16, %c0_17, %c2, %c0_18] : memref<1x8x20x64xf32, #tpu.memory_space<vmem>>, vector<1x8x1x64xf32>
    %14 = vector.shape_cast %13 : vector<1x8x1x64xf32> to vector<8x64xf32>
    %c0_19 = arith.constant 0 : index
    %c0_20 = arith.constant 0 : index
    %c3 = arith.constant 3 : index
    %c0_21 = arith.constant 0 : index
    %15 = vector.load %arg2[%c0_19, %c0_20, %c3, %c0_21] : memref<1x8x20x64xf32, #tpu.memory_space<vmem>>, vector<1x8x1x64xf32>
    %16 = vector.shape_cast %15 : vector<1x8x1x64xf32> to vector<8x64xf32>
    %c0_22 = arith.constant 0 : index
    %c0_23 = arith.constant 0 : index
    %c4 = arith.constant 4 : index
    %c0_24 = arith.constant 0 : index
    %17 = vector.load %arg2[%c0_22, %c0_23, %c4, %c0_24] : memref<1x8x20x64xf32, #tpu.memory_space<vmem>>, vector<1x8x1x64xf32>
    %18 = vector.shape_cast %17 : vector<1x8x1x64xf32> to vector<8x64xf32>
    %19 = tpu.concatenate %10, %12, %14, %16, %18 in 0 : vector<8x64xf32>, vector<8x64xf32>, vector<8x64xf32>, vector<8x64xf32>, vector<8x64xf32> -> vector<40x64xf32>
    %20 = arith.truncf %19 : vector<40x64xf32> to vector<40x64xbf16>
    %cst = arith.constant dense<0.000000e+00> : vector<16x64xf32>
    %21 = tpu.matmul %5, %20, %cst {dimension_numbers = #tpu.dot_dimension_numbers<[1], [0], [0], [1], [0, 0, 1, 1], [], []>} : vector<16x40xbf16>, vector<40x64xbf16>, vector<16x64xf32> -> vector<16x64xf32>
    %22 = arith.addf %21, %8 : vector<16x64xf32>
    %cst_25 = arith.constant 0.000000e+00 : f32
    %23 = vector.broadcast %cst_25 : f32 to vector<16x64xf32>
    %24 = arith.maximumf %22, %23 : vector<16x64xf32>
    %c0_26 = arith.constant 0 : index
    %c16 = arith.constant 16 : index
    %c0_27 = arith.constant 0 : index
    %25 = vector.load %arg5[%c0_26, %c16, %c0_27] : memref<1x32x256xf32, #tpu.memory_space<vmem>>, vector<1x16x64xf32>
    %26 = vector.shape_cast %25 : vector<1x16x64xf32> to vector<16x64xf32>
    %27 = vector.shape_cast %24 : vector<16x64xf32> to vector<1x16x64xf32>
    tpu.vector_store %arg5[%c0_26, %c16, %c0_27], %27 {strides = array<i32>} : memref<1x32x256xf32, #tpu.memory_space<vmem>>, vector<1x16x64xf32>,
    %c0_28 = arith.constant 0 : index
    %c0_29 = arith.constant 0 : index
    %c5 = arith.constant 5 : index
    %c0_30 = arith.constant 0 : index
    %28 = vector.load %arg2[%c0_28, %c0_29, %c5, %c0_30] : memref<1x8x20x64xf32, #tpu.memory_space<vmem>>, vector<1x8x1x64xf32>
    %29 = vector.shape_cast %28 : vector<1x8x1x64xf32> to vector<8x64xf32>
    %c0_31 = arith.constant 0 : index
    %c0_32 = arith.constant 0 : index
    %c6 = arith.constant 6 : index
    %c0_33 = arith.constant 0 : index
    %30 = vector.load %arg2[%c0_31, %c0_32, %c6, %c0_33] : memref<1x8x20x64xf32, #tpu.memory_space<vmem>>, vector<1x8x1x64xf32>
    %31 = vector.shape_cast %30 : vector<1x8x1x64xf32> to vector<8x64xf32>
    %c0_34 = arith.constant 0 : index
    %c0_35 = arith.constant 0 : index
    %c7 = arith.constant 7 : index
    %c0_36 = arith.constant 0 : index
    %32 = vector.load %arg2[%c0_34, %c0_35, %c7, %c0_36] : memref<1x8x20x64xf32, #tpu.memory_space<vmem>>, vector<1x8x1x64xf32>
    %33 = vector.shape_cast %32 : vector<1x8x1x64xf32> to vector<8x64xf32>
    %c0_37 = arith.constant 0 : index
    %c0_38 = arith.constant 0 : index
    %c8 = arith.constant 8 : index
    %c0_39 = arith.constant 0 : index
    %34 = vector.load %arg2[%c0_37, %c0_38, %c8, %c0_39] : memref<1x8x20x64xf32, #tpu.memory_space<vmem>>, vector<1x8x1x64xf32>
    %35 = vector.shape_cast %34 : vector<1x8x1x64xf32> to vector<8x64xf32>
    %c0_40 = arith.constant 0 : index
    %c0_41 = arith.constant 0 : index
    %c9 = arith.constant 9 : index
    %c0_42 = arith.constant 0 : index
    %36 = vector.load %arg2[%c0_40, %c0_41, %c9, %c0_42] : memref<1x8x20x64xf32, #tpu.memory_space<vmem>>, vector<1x8x1x64xf32>
    %37 = vector.shape_cast %36 : vector<1x8x1x64xf32> to vector<8x64xf32>
    %38 = tpu.concatenate %29, %31, %33, %35, %37 in 0 : vector<8x64xf32>, vector<8x64xf32>, vector<8x64xf32>, vector<8x64xf32>, vector<8x64xf32> -> vector<40x64xf32>
    %39 = arith.truncf %38 : vector<40x64xf32> to vector<40x64xbf16>
    %cst_43 = arith.constant dense<0.000000e+00> : vector<16x64xf32>
    %40 = tpu.matmul %5, %39, %cst_43 {dimension_numbers = #tpu.dot_dimension_numbers<[1], [0], [0], [1], [0, 0, 1, 1], [], []>} : vector<16x40xbf16>, vector<40x64xbf16>, vector<16x64xf32> -> vector<16x64xf32>
    %41 = arith.addf %40, %8 : vector<16x64xf32>
    %cst_44 = arith.constant 0.000000e+00 : f32
    %42 = vector.broadcast %cst_44 : f32 to vector<16x64xf32>
    %43 = arith.maximumf %41, %42 : vector<16x64xf32>
    %c0_45 = arith.constant 0 : index
    %c16_46 = arith.constant 16 : index
    %c64 = arith.constant 64 : index
    %44 = vector.load %arg5[%c0_45, %c16_46, %c64] : memref<1x32x256xf32, #tpu.memory_space<vmem>>, vector<1x16x64xf32>
    %45 = vector.shape_cast %44 : vector<1x16x64xf32> to vector<16x64xf32>
    %46 = vector.shape_cast %43 : vector<16x64xf32> to vector<1x16x64xf32>
    tpu.vector_store %arg5[%c0_45, %c16_46, %c64], %46 {strides = array<i32>} : memref<1x32x256xf32, #tpu.memory_space<vmem>>, vector<1x16x64xf32>,
    %c0_47 = arith.constant 0 : index
    %c0_48 = arith.constant 0 : index
    %c10 = arith.constant 10 : index
    %c0_49 = arith.constant 0 : index
    %47 = vector.load %arg2[%c0_47, %c0_48, %c10, %c0_49] : memref<1x8x20x64xf32, #tpu.memory_space<vmem>>, vector<1x8x1x64xf32>
    %48 = vector.shape_cast %47 : vector<1x8x1x64xf32> to vector<8x64xf32>
    %c0_50 = arith.constant 0 : index
    %c0_51 = arith.constant 0 : index
    %c11 = arith.constant 11 : index
    %c0_52 = arith.constant 0 : index
    %49 = vector.load %arg2[%c0_50, %c0_51, %c11, %c0_52] : memref<1x8x20x64xf32, #tpu.memory_space<vmem>>, vector<1x8x1x64xf32>
    %50 = vector.shape_cast %49 : vector<1x8x1x64xf32> to vector<8x64xf32>
    %c0_53 = arith.constant 0 : index
    %c0_54 = arith.constant 0 : index
    %c12 = arith.constant 12 : index
    %c0_55 = arith.constant 0 : index
    %51 = vector.load %arg2[%c0_53, %c0_54, %c12, %c0_55] : memref<1x8x20x64xf32, #tpu.memory_space<vmem>>, vector<1x8x1x64xf32>
    %52 = vector.shape_cast %51 : vector<1x8x1x64xf32> to vector<8x64xf32>
    %c0_56 = arith.constant 0 : index
    %c0_57 = arith.constant 0 : index
    %c13 = arith.constant 13 : index
    %c0_58 = arith.constant 0 : index
    %53 = vector.load %arg2[%c0_56, %c0_57, %c13, %c0_58] : memref<1x8x20x64xf32, #tpu.memory_space<vmem>>, vector<1x8x1x64xf32>
    %54 = vector.shape_cast %53 : vector<1x8x1x64xf32> to vector<8x64xf32>
    %c0_59 = arith.constant 0 : index
    %c0_60 = arith.constant 0 : index
    %c14 = arith.constant 14 : index
    %c0_61 = arith.constant 0 : index
    %55 = vector.load %arg2[%c0_59, %c0_60, %c14, %c0_61] : memref<1x8x20x64xf32, #tpu.memory_space<vmem>>, vector<1x8x1x64xf32>
    %56 = vector.shape_cast %55 : vector<1x8x1x64xf32> to vector<8x64xf32>
    %57 = tpu.concatenate %48, %50, %52, %54, %56 in 0 : vector<8x64xf32>, vector<8x64xf32>, vector<8x64xf32>, vector<8x64xf32>, vector<8x64xf32> -> vector<40x64xf32>
    %58 = arith.truncf %57 : vector<40x64xf32> to vector<40x64xbf16>
    %cst_62 = arith.constant dense<0.000000e+00> : vector<16x64xf32>
    %59 = tpu.matmul %5, %58, %cst_62 {dimension_numbers = #tpu.dot_dimension_numbers<[1], [0], [0], [1], [0, 0, 1, 1], [], []>} : vector<16x40xbf16>, vector<40x64xbf16>, vector<16x64xf32> -> vector<16x64xf32>
    %60 = arith.addf %59, %8 : vector<16x64xf32>
    %cst_63 = arith.constant 0.000000e+00 : f32
    %61 = vector.broadcast %cst_63 : f32 to vector<16x64xf32>
    %62 = arith.maximumf %60, %61 : vector<16x64xf32>
    %c0_64 = arith.constant 0 : index
    %c16_65 = arith.constant 16 : index
    %c128 = arith.constant 128 : index
    %63 = vector.load %arg5[%c0_64, %c16_65, %c128] : memref<1x32x256xf32, #tpu.memory_space<vmem>>, vector<1x16x64xf32>
    %64 = vector.shape_cast %63 : vector<1x16x64xf32> to vector<16x64xf32>
    %65 = vector.shape_cast %62 : vector<16x64xf32> to vector<1x16x64xf32>
    tpu.vector_store %arg5[%c0_64, %c16_65, %c128], %65 {strides = array<i32>} : memref<1x32x256xf32, #tpu.memory_space<vmem>>, vector<1x16x64xf32>,
    %c0_66 = arith.constant 0 : index
    %c0_67 = arith.constant 0 : index
    %c15 = arith.constant 15 : index
    %c0_68 = arith.constant 0 : index
    %66 = vector.load %arg2[%c0_66, %c0_67, %c15, %c0_68] : memref<1x8x20x64xf32, #tpu.memory_space<vmem>>, vector<1x8x1x64xf32>
    %67 = vector.shape_cast %66 : vector<1x8x1x64xf32> to vector<8x64xf32>
    %c0_69 = arith.constant 0 : index
    %c0_70 = arith.constant 0 : index
    %c16_71 = arith.constant 16 : index
    %c0_72 = arith.constant 0 : index
    %68 = vector.load %arg2[%c0_69, %c0_70, %c16_71, %c0_72] : memref<1x8x20x64xf32, #tpu.memory_space<vmem>>, vector<1x8x1x64xf32>
    %69 = vector.shape_cast %68 : vector<1x8x1x64xf32> to vector<8x64xf32>
    %c0_73 = arith.constant 0 : index
    %c0_74 = arith.constant 0 : index
    %c17 = arith.constant 17 : index
    %c0_75 = arith.constant 0 : index
    %70 = vector.load %arg2[%c0_73, %c0_74, %c17, %c0_75] : memref<1x8x20x64xf32, #tpu.memory_space<vmem>>, vector<1x8x1x64xf32>
    %71 = vector.shape_cast %70 : vector<1x8x1x64xf32> to vector<8x64xf32>
    %c0_76 = arith.constant 0 : index
    %c0_77 = arith.constant 0 : index
    %c18 = arith.constant 18 : index
    %c0_78 = arith.constant 0 : index
    %72 = vector.load %arg2[%c0_76, %c0_77, %c18, %c0_78] : memref<1x8x20x64xf32, #tpu.memory_space<vmem>>, vector<1x8x1x64xf32>
    %73 = vector.shape_cast %72 : vector<1x8x1x64xf32> to vector<8x64xf32>
    %c0_79 = arith.constant 0 : index
    %c0_80 = arith.constant 0 : index
    %c19 = arith.constant 19 : index
    %c0_81 = arith.constant 0 : index
    %74 = vector.load %arg2[%c0_79, %c0_80, %c19, %c0_81] : memref<1x8x20x64xf32, #tpu.memory_space<vmem>>, vector<1x8x1x64xf32>
    %75 = vector.shape_cast %74 : vector<1x8x1x64xf32> to vector<8x64xf32>
    %76 = tpu.concatenate %67, %69, %71, %73, %75 in 0 : vector<8x64xf32>, vector<8x64xf32>, vector<8x64xf32>, vector<8x64xf32>, vector<8x64xf32> -> vector<40x64xf32>
    %77 = arith.truncf %76 : vector<40x64xf32> to vector<40x64xbf16>
    %cst_82 = arith.constant dense<0.000000e+00> : vector<16x64xf32>
    %78 = tpu.matmul %5, %77, %cst_82 {dimension_numbers = #tpu.dot_dimension_numbers<[1], [0], [0], [1], [0, 0, 1, 1], [], []>} : vector<16x40xbf16>, vector<40x64xbf16>, vector<16x64xf32> -> vector<16x64xf32>
    %79 = arith.addf %78, %8 : vector<16x64xf32>
    %cst_83 = arith.constant 0.000000e+00 : f32
    %80 = vector.broadcast %cst_83 : f32 to vector<16x64xf32>
    %81 = arith.maximumf %79, %80 : vector<16x64xf32>
    %c0_84 = arith.constant 0 : index
    %c16_85 = arith.constant 16 : index
    %c192 = arith.constant 192 : index
    %82 = vector.load %arg5[%c0_84, %c16_85, %c192] : memref<1x32x256xf32, #tpu.memory_space<vmem>>, vector<1x16x64xf32>
    %83 = vector.shape_cast %82 : vector<1x16x64xf32> to vector<16x64xf32>
    %84 = vector.shape_cast %81 : vector<16x64xf32> to vector<1x16x64xf32>
    tpu.vector_store %arg5[%c0_84, %c16_85, %c192], %84 {strides = array<i32>} : memref<1x32x256xf32, #tpu.memory_space<vmem>>, vector<1x16x64xf32>,
    return
  }
  func.func @transform_0(%arg0: i32) -> (i32, i32, i32) {
    %c0_i32 = arith.constant 0 : i32
    %c0_i32_0 = arith.constant 0 : i32
    %c0_i32_1 = arith.constant 0 : i32
    return %arg0, %c0_i32, %c0_i32_0 : i32, i32, i32
  }
  func.func @transform_1(%arg0: i32) -> (i32, i32, i32, i32) {
    %c0_i32 = arith.constant 0 : i32
    %c0_i32_0 = arith.constant 0 : i32
    %c0_i32_1 = arith.constant 0 : i32
    %c0_i32_2 = arith.constant 0 : i32
    return %arg0, %c0_i32, %c0_i32_0, %c0_i32_1 : i32, i32, i32, i32
  }
  func.func @transform_2(%arg0: i32) -> (i32, i32) {
    %c0_i32 = arith.constant 0 : i32
    %c0_i32_0 = arith.constant 0 : i32
    %c0_i32_1 = arith.constant 0 : i32
    return %c0_i32, %c0_i32_0 : i32, i32
  }
  func.func @transform_3(%arg0: i32) -> (i32, i32) {
    %c0_i32 = arith.constant 0 : i32
    %c0_i32_0 = arith.constant 0 : i32
    %c0_i32_1 = arith.constant 0 : i32
    return %c0_i32, %c0_i32_0 : i32, i32
  }
  func.func @transform_4(%arg0: i32) -> (i32, i32, i32) {
    %c0_i32 = arith.constant 0 : i32
    %c0_i32_0 = arith.constant 0 : i32
    %c0_i32_1 = arith.constant 0 : i32
    return %arg0, %c0_i32, %c0_i32_0 : i32, i32, i32
  }
}

</mosaic_0001>

<bundles_post_ra>
// kernel: tpu_custom_call.1
= control target key start
LH: loop header
LB: loop body
LE: loop exit
PB: predicated region body
PF: predicated region fallthrough
CT: control target
= control target key end

     0   :  { %9 = vsyncpa [#allocation3], 0  ;;  %s1676_s0 = inlined_call_operand.vmem [shape: f32[2,16,256], index: 0, kind: input, shape index: {}]   ;;  %s1677_s1 = inlined_call_operand.vmem [shape: f32[2,8,20,64], index: 1, kind: input, shape index: {}]   ;;  %s1678_s2 = inlined_call_operand.vmem [shape: bf16[16,40], index: 2, kind: input, shape index: {}]   ;;  %s1679_s3 = inlined_call_operand.vmem [shape: f32[16,1], index: 3, kind: input, shape index: {}]   ;;  %s1680_s4 = inlined_call_operand.hbm [shape: f32[2,32,256], index: 4, kind: output, shape index: {}]  }
   0x1   :  { %11 = vsyncpa [#allocation3 + $0x1], 0  ;;  %s1242_s15 = smov 0   ;;  %s1244_s16 = smov 0  }
   0x2   :  { %s1246_s17 = smov 0   ;;  %s1248_s18 = smov 0  }
   0x3 LB: > { %s1263_s19 = sadd.s32 4294967295, %s1211_s18   ;;  %s1080_s20 = sadd.s32 4294967294, %s1211_s18   ;;  %s1211_s18 = sphi %s1248_s18, %s1686_s18   ;;  %s1207_s17 = sphi %s1246_s17, %s1685_s17   ;;  %s1203_s16 = sphi %s1244_s16, %s1684_s16   ;;  %s1199_s15 = sphi %s1242_s15, %s1683_s15  }
   0x4   : > { %s1267_s21 = sadd.s32 1, %s1211_s18   ;;  %s118_s22 = sadd.s32 1, %s1207_s17 }
   0x5   : > { %s115_s23 = ssub.s32 %s1211_s18, %s1267_s21  ;;  %p128_p0 = scmp.ne.s32.totalorder %s1207_s17, %s1203_s16 }
   0x6   : > { %p116_p1 = scmp.eq.s32.totalorder %s115_s23, 0  ;;  %p129_p2 = scmp.eq.s32.totalorder %s1263_s19, 1 }
   0x7   : > { %p134_p3 = scmp.ne.s32.totalorder %s1203_s16, %s1199_s15  ;;  %p135_p4 = scmp.eq.s32.totalorder %s1080_s20, 1 }
   0x8   : > { %s1278_s24 = scalar_select %p116_p1, %s1207_s17, %s118_s22  }
   0x9   : > { %p1280_p5 = por %p129_p2, %p128_p0  ;;  %p1284_p6 = por %p135_p4, %p134_p3 }
   0xa   : > { %p1083_p7 = scmp.ge.s32.totalorder %s1211_s18, 1  ;;  %p175_p8 = scmp.lt.s32.totalorder %s1211_s18, 3 }
   0xc   : > { %p176_p9 = pnand %p1083_p7, %p175_p8 }
   0xd   : > { %p206_p10 = scmp.lt.s32.totalorder (!%p176_p9), %s1263_s19, 1  ;;  %s203_s12 = sand.u32 (!%p176_p9), 1, %s1203_s16  }
   0xe   : > { %179 = sbr.rel (%p176_p9) target bundleno = 357 (0x165), region = 36  ;;  %s1084_s13 = sshll.u32 (!%p176_p9), %s203_s12, 6 }
   0xf   : > { %s1620_s14 = scalar_lea.vmem (!%p176_p9), [#allocation2], %s1084_s13  ;;  %s1214_s20 = smov (!%p176_p9), 64  }
  0x10   : > { %s1003_s7 = sshll.u32 (!%p176_p9), %s1620_s14, 4  ;;  %s991_s9 = scalar_lea.sflag (!%p176_p9), [#allocation3], %s203_s12  ;;  %s1004_s7 = int_to_ptr.vmem [resolvable:$true] %s1003_s7 }
  0x13   : > { %s1292_s27 = scalar_select %p206_p10, %s1263_s19, 1  ;;  %vm288_vm0 = vcmask 1041409   ;;  %vm291_vm1 = vcmask 1042434   ;;  %vm294_vm2 = vcmask 1043459   ;;  %vm297_vm3 = vcmask 1044484  }
  0x14   : > { %vm300_vm4 = vcmask 1045509   ;;  %vm303_vm5 = vcmask 1046534   ;;  %vm306_vm6 = vcmask 1047559   ;;  %vm413_vm7 = vcmask 1043456  }
  0x15   : > { %s1104_s28 = smul.u32 192, %s1292_s27  ;;  %vm409_vm8 = vcmask 326656   ;;  %vm433_vm9 = vcmask 523264   ;;  %s1101_s22 = sshll.u32 %s1292_s27, 5  ;;  %vm621_vm10 = vcmask 1048064  }
  0x16   : > { %s210_s29 = scalar_lea.vmem %s1676_s0, %s1101_s22  ;;  %s1103_s27 = sshll.u32 %s1263_s19, 6 }
  0x17   : > { %s1298_s5 = scalar_lea.vmem %s1677_s1, %s1104_s28  ;;  %s1002_s6 = scalar_lea.hbm %s1680_s4, %s1103_s27 }
  0x18   : > { %v271_v0 = vld [vmem:[%s1298_s5 + $0x4] sm:$0x1]  ;;  %v272_v1 = vld [vmem:[%s1298_s5 + $0x1c] sm:$0x1]  ;;  %v273_v2 = vld [vmem:[%s1298_s5 + $0x34] sm:$0x1] }
  0x19   : > { %v274_v3 = vld [vmem:[%s1298_s5 + $0x4c] sm:$0x1]  ;;  %v275_v4 = vld [vmem:[%s1298_s5 + $0x64] sm:$0x1]  ;;  %v276_v5 = vld [vmem:[%s1298_s5 + $0x7c] sm:$0x1] }
  0x1a   : > { %v277_v6 = vld [vmem:[%s1298_s5 + $0x94] sm:$0x1]  ;;  %v278_v7 = vld [vmem:[%s1298_s5 + $0xac] sm:$0x1]  ;;  %v386_v8 = vrot.slane %v272_v1, 7  ;;  %v388_v9 = vrot.slane %v273_v2, 6 }
  0x1b   : > { %v390_v10 = vrot.slane %v274_v3, 5  ;;  %v392_v11 = vrot.slane %v275_v4, 4  ;;  %v394_v12 = vrot.slane %v276_v5, 3  ;;  %v468_v13 = vld [vmem:[%s1298_s5 + $0x9] sm:$0x1]  ;;  %v396_v15 = vrot.slane %v277_v6, 2 }
  0x1c   : > { %v387_v14 = vsel %vm288_vm0, %v386_v8, %v271_v0  ;;  %v398_v16 = vrot.slane %v278_v7, 1  ;;  %v469_v17 = vld [vmem:[%s1298_s5 + $0x21] sm:$0x1]  ;;  %v470_v18 = vld [vmem:[%s1298_s5 + $0x39] sm:$0x1]  ;;  %s1005_s8 = sshll.u32 %s1002_s6, 4  ;;  %s1006_s8 = int_to_ptr.hbm [resolvable:$true] %s1005_s8 }
  0x1d   : > { %v389_v19 = vsel %vm291_vm1, %v388_v9, %v387_v14  ;;  %v471_v20 = vld [vmem:[%s1298_s5 + $0x51] sm:$0x1]  ;;  %v472_v21 = vld [vmem:[%s1298_s5 + $0x69] sm:$0x1]  ;;  %v473_v22 = vld [vmem:[%s1298_s5 + $0x81] sm:$0x1] }
  0x1e   : > { %v391_v23 = vsel %vm294_vm2, %v390_v10, %v389_v19  ;;  %v474_v24 = vld [vmem:[%s1298_s5 + $0x99] sm:$0x1]  ;;  %v475_v25 = vld [vmem:[%s1298_s5 + $0xb1] sm:$0x1]  ;;  %v576_v26 = vrot.slane %v469_v17, 7  ;;  %v578_v27 = vrot.slane %v470_v18, 6 }
  0x1f   : > { %v393_v28 = vsel %vm297_vm3, %v392_v11, %v391_v23  ;;  %v580_v29 = vrot.slane %v471_v20, 5  ;;  %v582_v30 = vrot.slane %v472_v21, 4  ;;  %v584_v31 = vrot.slane %v473_v22, 3  ;;  %v656_v32 = vld [vmem:[%s1298_s5 + $0xe] sm:$0x1]  ;;  %s1163_s10 = sshra.s32 %s1006_s8, 4  ;;  %s1164_s10 = int_to_ptr.hbm [resolvable:$true] %s1163_s10 }
  0x20   : > { %v395_v33 = vsel %vm300_vm4, %v394_v12, %v393_v28  ;;  %v577_v34 = vsel %vm288_vm0, %v576_v26, %v468_v13  ;;  %v586_v35 = vrot.slane %v474_v24, 2  ;;  %v588_v36 = vrot.slane %v475_v25, 1  ;;  %v657_v37 = vld [vmem:[%s1298_s5 + $0x26] sm:$0x1]  ;;  %v658_v38 = vld [vmem:[%s1298_s5 + $0x3e] sm:$0x1]  ;;  %p1170_p0 = scmp.lt.s32.totalorder %s1164_s10, %s1680_s4 }
  0x21   : > { %v397_v39 = vsel %vm303_vm5, %v396_v15, %v395_v33  ;;  %v579_v40 = vsel %vm291_vm1, %v578_v27, %v577_v34  ;;  %v659_v41 = vld [vmem:[%s1298_s5 + $0x56] sm:$0x1]  ;;  %v660_v42 = vld [vmem:[%s1298_s5 + $0x6e] sm:$0x1]  ;;  %v661_v43 = vld [vmem:[%s1298_s5 + $0x86] sm:$0x1] }
  0x22   : > { %v399_v44 = vsel %vm306_vm6, %v398_v16, %v397_v39  ;;  %v581_v45 = vsel %vm294_vm2, %v580_v29, %v579_v40  ;;  %v662_v46 = vld [vmem:[%s1298_s5 + $0x9e] sm:$0x1]  ;;  %v663_v47 = vld [vmem:[%s1298_s5 + $0xb6] sm:$0x1]  ;;  %v764_v48 = vrot.slane %v657_v37, 7  ;;  %v766_v49 = vrot.slane %v658_v38, 6 }
  0x23   : > { %v403_v50 = vpack.c.bf16 %v399_v44, %v399_v44  ;;  %v583_v51 = vsel %vm297_vm3, %v582_v30, %v581_v45  ;;  %v768_v52 = vrot.slane %v659_v41, 5  ;;  %v770_v53 = vrot.slane %v660_v42, 4  ;;  %v835_v54 = vld [vmem:[%s1298_s5 + $0x13] sm:$0x1]  ;;  %v836_v55 = vld [vmem:[%s1298_s5 + $0x2b] sm:$0x1] }
  0x24   : > { %v585_v56 = vsel %vm300_vm4, %v584_v31, %v583_v51  ;;  %v765_v57 = vsel %vm288_vm0, %v764_v48, %v656_v32  ;;  %v772_v58 = vrot.slane %v661_v43, 3  ;;  %v774_v59 = vrot.slane %v662_v46, 2  ;;  %v837_v60 = vld [vmem:[%s1298_s5 + $0x43] sm:$0x1]  ;;  %v838_v61 = vld [vmem:[%s1298_s5 + $0x5b] sm:$0x1] }
  0x25   : > { %v415_v62 = vsel %vm413_vm7, %v403_v50, 0  ;;  %v587_v63 = vsel %vm303_vm5, %v586_v35, %v585_v56  ;;  %v767_v0 = vsel %vm291_vm1, %v766_v49, %v765_v57  ;;  %v776_v1 = vrot.slane %v663_v47, 1  ;;  %v839_v2 = vld [vmem:[%s1298_s5 + $0x73] sm:$0x1]  ;;  %v840_v3 = vld [vmem:[%s1298_s5 + $0x8b] sm:$0x1] }
  0x26   : > { %422 = vmatpush.bf16.msra.mxu0 %v415_v62  ;;  %v589_v4 = vsel %vm306_vm6, %v588_v36, %v587_v63  ;;  %v769_v5 = vsel %vm294_vm2, %v768_v52, %v767_v0  ;;  %v841_v6 = vld [vmem:[%s1298_s5 + $0xa3] sm:$0x1]  ;;  %v943_v7 = vrot.slane %v836_v55, 7  ;;  %v945_v8 = vrot.slane %v837_v60, 6  ;;  %v842_v11 = vld [vmem:[%s1298_s5 + $0xbb] sm:$0x1] }
  0x27   : > { %v593_v9 = vpack.c.bf16 %v589_v4, %v589_v4  ;;  %v771_v10 = vsel %vm297_vm3, %v770_v53, %v769_v5  ;;  %v947_v12 = vrot.slane %v838_v61, 5  ;;  %v949_v13 = vrot.slane %v839_v2, 4  ;;  %v256_v21 = vld [vmem:[%s1298_s5 + $0x1a] sm:$0x1]  ;;  %v255_v25 = vld [vmem:[%s1298_s5 + $0x2] sm:$0x1] }
  0x28   : > { %v773_v14 = vsel %vm300_vm4, %v772_v58, %v771_v10  ;;  %v944_v15 = vsel %vm288_vm0, %v943_v7, %v835_v54  ;;  %v951_v16 = vrot.slane %v840_v3, 3  ;;  %v953_v20 = vrot.slane %v841_v6, 2  ;;  %v257_v26 = vld [vmem:[%s1298_s5 + $0x32] sm:$0x1]  ;;  %v258_v27 = vld [vmem:[%s1298_s5 + $0x4a] sm:$0x1] }
  0x29   : > { %v595_v17 = vsel %vm413_vm7, %v593_v9, 0  ;;  %v775_v18 = vsel %vm303_vm5, %v774_v59, %v773_v14  ;;  %v946_v19 = vsel %vm291_vm1, %v945_v8, %v944_v15  ;;  %v955_v24 = vrot.slane %v842_v11, 1  ;;  %v259_v30 = vld [vmem:[%s1298_s5 + $0x62] sm:$0x1]  ;;  %v260_v31 = vld [vmem:[%s1298_s5 + $0x7a] sm:$0x1] }
  0x2a   : > { %602 = vmatpush.bf16.msra.mxu1 %v595_v17  ;;  %v777_v22 = vsel %vm306_vm6, %v776_v1, %v775_v18  ;;  %v948_v23 = vsel %vm294_vm2, %v947_v12, %v946_v19  ;;  %v261_v32 = vld [vmem:[%s1298_s5 + $0x92] sm:$0x1]  ;;  %v262_v34 = vld [vmem:[%s1298_s5 + $0xaa] sm:$0x1]  ;;  %v264_v35 = vld [vmem:[%s1298_s5 + $0x1b] sm:$0x1] }
  0x2b   : > { %v781_v28 = vpack.c.bf16 %v777_v22, %v777_v22  ;;  %v950_v29 = vsel %vm297_vm3, %v949_v13, %v948_v23  ;;  %v265_v36 = vld [vmem:[%s1298_s5 + $0x33] sm:$0x1]  ;;  %v266_v39 = vld [vmem:[%s1298_s5 + $0x4b] sm:$0x1]  ;;  %v340_v40 = vrot.slane %v256_v21, 7  ;;  %v342_v41 = vrot.slane %v257_v26, 6 }
  0x2c   : > { %v952_v33 = vsel %vm300_vm4, %v951_v16, %v950_v29  ;;  %v263_v43 = vld [vmem:[%s1298_s5 + $0x3] sm:$0x1]  ;;  %v344_v45 = vrot.slane %v258_v27, 5  ;;  %v346_v46 = vrot.slane %v259_v30, 4  ;;  %v268_v48 = vld [vmem:[%s1298_s5 + $0x7b] sm:$0x1] }
  0x2d   : > { %v783_v37 = vsel %vm413_vm7, %v781_v28, 0  ;;  %v954_v38 = vsel %vm303_vm5, %v953_v20, %v952_v33  ;;  %v267_v44 = vld [vmem:[%s1298_s5 + $0x63] sm:$0x1]  ;;  %v269_v49 = vld [vmem:[%s1298_s5 + $0x93] sm:$0x1]  ;;  %v341_v50 = vsel %vm288_vm0, %v340_v40, %v255_v25  ;;  %v348_v51 = vrot.slane %v260_v31, 3 }
  0x2e   : > { %790 = vmatpush.bf16.msra.mxu2 %v783_v37  ;;  %v956_v42 = vsel %vm306_vm6, %v955_v24, %v954_v38  ;;  %v350_v52 = vrot.slane %v261_v32, 2  ;;  %v270_v53 = vld [vmem:[%s1298_s5 + $0xab] sm:$0x1]  ;;  %v343_v54 = vsel %vm291_vm1, %v342_v41, %v341_v50  ;;  %v363_v55 = vrot.slane %v264_v35, 7  ;;  %v453_v1 = vld [vmem:[%s1298_s5 + $0x1f] sm:$0x1] }
  0x2f   : > { %v960_v47 = vpack.c.bf16 %v956_v42, %v956_v42  ;;  %v365_v56 = vrot.slane %v265_v36, 6  ;;  %v367_v57 = vrot.slane %v266_v39, 5  ;;  %v345_v59 = vsel %vm294_vm2, %v344_v45, %v343_v54  ;;  %v454_v2 = vld [vmem:[%s1298_s5 + $0x37] sm:$0x1]  ;;  %v452_v7 = vld [vmem:[%s1298_s5 + $0x7] sm:$0x1] }
  0x30   : > { %v352_v60 = vrot.slane %v262_v34, 1  ;;  %v369_v61 = vrot.slane %v267_v44, 4  ;;  %v347_v62 = vsel %vm297_vm3, %v346_v46, %v345_v59  ;;  %v364_v63 = vsel %vm288_vm0, %v363_v55, %v263_v43  ;;  %v455_v8 = vld [vmem:[%s1298_s5 + $0x4f] sm:$0x1]  ;;  %v456_v9 = vld [vmem:[%s1298_s5 + $0x67] sm:$0x1] }
  0x31   : > { %v962_v58 = vsel %vm413_vm7, %v960_v47, 0  ;;  %v371_v0 = vrot.slane %v268_v48, 3  ;;  %v349_v3 = vsel %vm300_vm4, %v348_v51, %v347_v62  ;;  %v366_v4 = vsel %vm291_vm1, %v365_v56, %v364_v63  ;;  %v457_v12 = vld [vmem:[%s1298_s5 + $0x7f] sm:$0x1]  ;;  %v458_v13 = vld [vmem:[%s1298_s5 + $0x97] sm:$0x1] }
  0x32   : > { %969 = vmatpush.bf16.msra.mxu3 %v962_v58  ;;  %v373_v5 = vrot.slane %v269_v49, 2  ;;  %v375_v6 = vrot.slane %v270_v53, 1  ;;  %v351_v10 = vsel %vm303_vm5, %v350_v52, %v349_v3  ;;  %v368_v11 = vsel %vm294_vm2, %v367_v57, %v366_v4  ;;  %v459_v14 = vld [vmem:[%s1298_s5 + $0xaf] sm:$0x1]  ;;  %v460_v17 = vld [vmem:[%s1298_s5 + $0x8] sm:$0x1] }
  0x33   : > { %v353_v15 = vsel %vm306_vm6, %v352_v60, %v351_v10  ;;  %v370_v16 = vsel %vm297_vm3, %v369_v61, %v368_v11  ;;  %v461_v18 = vld [vmem:[%s1298_s5 + $0x20] sm:$0x1]  ;;  %v462_v19 = vld [vmem:[%s1298_s5 + $0x38] sm:$0x1]  ;;  %v463_v20 = vld [vmem:[%s1298_s5 + $0x50] sm:$0x1] }
  0x34   : > { %v372_v21 = vsel %vm300_vm4, %v371_v0, %v370_v16  ;;  %v464_v22 = vld [vmem:[%s1298_s5 + $0x68] sm:$0x1]  ;;  %v530_v23 = vrot.slane %v453_v1, 7  ;;  %v532_v24 = vrot.slane %v454_v2, 6  ;;  %v534_v25 = vrot.slane %v455_v8, 5  ;;  %s1165_s19 = scalar_lea.hbm %s1164_s10, 64 }
  0x35   : > { %v374_v26 = vsel %vm303_vm5, %v373_v5, %v372_v21  ;;  %v465_v27 = vld [vmem:[%s1298_s5 + $0x80] sm:$0x1]  ;;  %v536_v28 = vrot.slane %v456_v9, 4  ;;  %v538_v29 = vrot.slane %v457_v12, 3  ;;  %v540_v30 = vrot.slane %v458_v13, 2  ;;  %p1166_p11 = scmp.ne.s32.totalorder %s1164_s10, %s1165_s19 }
  0x36   : > { %v376_v31 = vsel %vm306_vm6, %v375_v6, %v374_v26  ;;  %v466_v32 = vld [vmem:[%s1298_s5 + $0x98] sm:$0x1]  ;;  %v531_v33 = vsel %vm288_vm0, %v530_v23, %v452_v7  ;;  %v542_v34 = vrot.slane %v459_v14, 1  ;;  %v553_v35 = vrot.slane %v461_v18, 7  ;;  %v467_v37 = vld [vmem:[%s1298_s5 + $0xb0] sm:$0x1] }
  0x37   : > { %v402_v36 = vpack.c.bf16 %v376_v31, %v353_v15  ;;  %v533_v38 = vsel %vm291_vm1, %v532_v24, %v531_v33  ;;  %v555_v39 = vrot.slane %v462_v19, 6  ;;  %v557_v40 = vrot.slane %v463_v20, 5  ;;  %v641_v45 = vld [vmem:[%s1298_s5 + $0x24] sm:$0x1]  ;;  %v640_v49 = vld [vmem:[%s1298_s5 + $0xc] sm:$0x1]  ;;  %p1167_p12 = pnand %p1166_p11, %p1280_p5 }
  0x38   : > { %v535_v41 = vsel %vm294_vm2, %v534_v25, %v533_v38  ;;  %v554_v42 = vsel %vm288_vm0, %v553_v35, %v460_v17  ;;  %v559_v43 = vrot.slane %v464_v22, 4  ;;  %v561_v44 = vrot.slane %v465_v27, 3  ;;  %v642_v50 = vld [vmem:[%s1298_s5 + $0x3c] sm:$0x1]  ;;  %v643_v51 = vld [vmem:[%s1298_s5 + $0x54] sm:$0x1] }
  0x39   : > { %423 = vmatpush.bf16.msra.mxu0 %v402_v36  ;;  %v537_v46 = vsel %vm297_vm3, %v536_v28, %v535_v41  ;;  %v556_v47 = vsel %vm291_vm1, %v555_v39, %v554_v42  ;;  %v563_v48 = vrot.slane %v466_v32, 2  ;;  %v565_v54 = vrot.slane %v467_v37, 1  ;;  %v644_v55 = vld [vmem:[%s1298_s5 + $0x6c] sm:$0x1]  ;;  %v645_v56 = vld [vmem:[%s1298_s5 + $0x84] sm:$0x1]  ;;  %p1168_p13 = pneg %p1167_p12 }
  0x3a   : > { %v539_v52 = vsel %vm300_vm4, %v538_v29, %v537_v46  ;;  %v558_v53 = vsel %vm294_vm2, %v557_v40, %v556_v47  ;;  %v646_v59 = vld [vmem:[%s1298_s5 + $0x9c] sm:$0x1]  ;;  %v647_v60 = vld [vmem:[%s1298_s5 + $0xb4] sm:$0x1]  ;;  %v649_v61 = vld [vmem:[%s1298_s5 + $0x25] sm:$0x1] }
  0x3b   : > { %v541_v57 = vsel %vm303_vm5, %v540_v30, %v539_v52  ;;  %v560_v58 = vsel %vm297_vm3, %v559_v43, %v558_v53  ;;  %v648_v0 = vld [vmem:[%s1298_s5 + $0xd] sm:$0x1]  ;;  %v650_v1 = vld [vmem:[%s1298_s5 + $0x3d] sm:$0x1]  ;;  %v651_v2 = vld [vmem:[%s1298_s5 + $0x55] sm:$0x1] }
  0x3c   : > { %v543_v62 = vsel %vm306_vm6, %v542_v34, %v541_v57  ;;  %v562_v63 = vsel %vm300_vm4, %v561_v44, %v560_v58  ;;  %v718_v3 = vrot.slane %v641_v45, 7  ;;  %v720_v4 = vrot.slane %v642_v50, 6  ;;  %v652_v6 = vld [vmem:[%s1298_s5 + $0x6d] sm:$0x1]  ;;  %v653_v7 = vld [vmem:[%s1298_s5 + $0x85] sm:$0x1] }
  0x3d   : > { %v564_v5 = vsel %vm303_vm5, %v563_v48, %v562_v63  ;;  %v722_v8 = vrot.slane %v643_v51, 5  ;;  %v724_v9 = vrot.slane %v644_v55, 4  ;;  %v654_v11 = vld [vmem:[%s1298_s5 + $0x9d] sm:$0x1]  ;;  %v655_v12 = vld [vmem:[%s1298_s5 + $0xb5] sm:$0x1] }
  0x3e   : > { %v566_v10 = vsel %vm306_vm6, %v565_v54, %v564_v5  ;;  %v719_v13 = vsel %vm288_vm0, %v718_v3, %v640_v49  ;;  %v726_v14 = vrot.slane %v645_v56, 3  ;;  %v728_v15 = vrot.slane %v646_v59, 2  ;;  %v820_v20 = vld [vmem:[%s1298_s5 + $0x29] sm:$0x1]  ;;  %v821_v21 = vld [vmem:[%s1298_s5 + $0x41] sm:$0x1] }
  0x3f   : > { %v592_v16 = vpack.c.bf16 %v566_v10, %v543_v62  ;;  %v721_v17 = vsel %vm291_vm1, %v720_v4, %v719_v13  ;;  %v741_v18 = vrot.slane %v649_v61, 7  ;;  %v743_v19 = vrot.slane %v650_v1, 6  ;;  %v822_v26 = vld [vmem:[%s1298_s5 + $0x59] sm:$0x1]  ;;  %v819_v30 = vld [vmem:[%s1298_s5 + $0x11] sm:$0x1] }
  0x40   : > { %v723_v22 = vsel %vm294_vm2, %v722_v8, %v721_v17  ;;  %v730_v23 = vrot.slane %v647_v60, 1  ;;  %v745_v24 = vrot.slane %v651_v2, 5  ;;  %v747_v25 = vrot.slane %v652_v6, 4  ;;  %v823_v31 = vld [vmem:[%s1298_s5 + $0x71] sm:$0x1] }
  0x41   : > { %603 = vmatpush.bf16.msra.mxu1 %v592_v16  ;;  %v725_v27 = vsel %vm297_vm3, %v724_v9, %v723_v22  ;;  %v742_v28 = vsel %vm288_vm0, %v741_v18, %v648_v0  ;;  %v749_v29 = vrot.slane %v653_v7, 3  ;;  %v824_v32 = vld [vmem:[%s1298_s5 + $0x89] sm:$0x1]  ;;  %v751_v35 = vrot.slane %v654_v11, 2  ;;  %v825_v36 = vld [vmem:[%s1298_s5 + $0xa1] sm:$0x1] }
  0x42   : > { %v727_v33 = vsel %vm300_vm4, %v726_v14, %v725_v27  ;;  %v744_v34 = vsel %vm291_vm1, %v743_v19, %v742_v28  ;;  %v826_v37 = vld [vmem:[%s1298_s5 + $0xb9] sm:$0x1]  ;;  %v753_v40 = vrot.slane %v655_v12, 1  ;;  %v828_v41 = vld [vmem:[%s1298_s5 + $0x2a] sm:$0x1]  ;;  %v897_v48 = vrot.slane %v820_v20, 7 }
  0x43   : > { %v729_v38 = vsel %vm303_vm5, %v728_v15, %v727_v33  ;;  %v746_v39 = vsel %vm294_vm2, %v745_v24, %v744_v34  ;;  %v829_v42 = vld [vmem:[%s1298_s5 + $0x42] sm:$0x1]  ;;  %v827_v45 = vld [vmem:[%s1298_s5 + $0x12] sm:$0x1]  ;;  %v830_v46 = vld [vmem:[%s1298_s5 + $0x5a] sm:$0x1] }
  0x44   : > { %v731_v43 = vsel %vm306_vm6, %v730_v23, %v729_v38  ;;  %v748_v44 = vsel %vm297_vm3, %v747_v25, %v746_v39  ;;  %v831_v47 = vld [vmem:[%s1298_s5 + $0x72] sm:$0x1]  ;;  %v899_v49 = vrot.slane %v821_v21, 6  ;;  %v832_v51 = vld [vmem:[%s1298_s5 + $0x8a] sm:$0x1]  ;;  %v901_v52 = vrot.slane %v822_v26, 5 }
  0x45   : > { %v750_v50 = vsel %vm300_vm4, %v749_v29, %v748_v44  ;;  %v903_v53 = vrot.slane %v823_v31, 4  ;;  %v905_v54 = vrot.slane %v824_v32, 3  ;;  %v833_v56 = vld [vmem:[%s1298_s5 + $0xa2] sm:$0x1]  ;;  %v834_v57 = vld [vmem:[%s1298_s5 + $0xba] sm:$0x1]  ;;  %v898_v58 = vsel %vm288_vm0, %v897_v48, %v819_v30 }
  0x46   : > { %v752_v55 = vsel %vm303_vm5, %v751_v35, %v750_v50  ;;  %v907_v59 = vrot.slane %v825_v36, 2  ;;  %v909_v60 = vrot.slane %v826_v37, 1  ;;  %v900_v62 = vsel %vm291_vm1, %v899_v49, %v898_v58  ;;  %v239_v1 = vld [vmem:[%s1298_s5] sm:$0x1]  ;;  %v240_v2 = vld [vmem:[%s1298_s5 + $0x18] sm:$0x1] }
  0x47   : > { %v754_v61 = vsel %vm306_vm6, %v753_v40, %v752_v55  ;;  %v920_v63 = vrot.slane %v828_v41, 7  ;;  %v922_v0 = vrot.slane %v829_v42, 6  ;;  %v902_v4 = vsel %vm294_vm2, %v901_v52, %v900_v62  ;;  %v241_v7 = vld [vmem:[%s1298_s5 + $0x30] sm:$0x1]  ;;  %v242_v8 = vld [vmem:[%s1298_s5 + $0x48] sm:$0x1] }
  0x48   : > { %v780_v3 = vpack.c.bf16 %v754_v61, %v731_v43  ;;  %v924_v5 = vrot.slane %v830_v46, 5  ;;  %v926_v6 = vrot.slane %v831_v47, 4  ;;  %v904_v9 = vsel %vm297_vm3, %v903_v53, %v902_v4  ;;  %v243_v12 = vld [vmem:[%s1298_s5 + $0x60] sm:$0x1]  ;;  %v244_v13 = vld [vmem:[%s1298_s5 + $0x78] sm:$0x1] }
  0x49   : > { %v921_v10 = vsel %vm288_vm0, %v920_v63, %v827_v45  ;;  %v928_v11 = vrot.slane %v832_v51, 3  ;;  %v906_v14 = vsel %vm300_vm4, %v905_v54, %v904_v9  ;;  %v930_v16 = vrot.slane %v833_v56, 2  ;;  %v245_v17 = vld [vmem:[%s1298_s5 + $0x90] sm:$0x1]  ;;  %v246_v18 = vld [vmem:[%s1298_s5 + $0xa8] sm:$0x1] }
  0x4a   : > { %791 = vmatpush.bf16.msra.mxu2 %v780_v3  ;;  %v923_v15 = vsel %vm291_vm1, %v922_v0, %v921_v10  ;;  %v287_v19 = vrot.slane %v240_v2, 7  ;;  %v908_v20 = vsel %vm303_vm5, %v907_v59, %v906_v14  ;;  %v932_v22 = vrot.slane %v834_v57, 1  ;;  %v248_v23 = vld [vmem:[%s1298_s5 + $0x19] sm:$0x1]  ;;  %v249_v24 = vld [vmem:[%s1298_s5 + $0x31] sm:$0x1] }
  0x4b   : > { %v925_v21 = vsel %vm294_vm2, %v924_v5, %v923_v15  ;;  %v910_v25 = vsel %vm306_vm6, %v909_v60, %v908_v20  ;;  %v247_v27 = vld [vmem:[%s1298_s5 + $0x1] sm:$0x1]  ;;  %v250_v28 = vld [vmem:[%s1298_s5 + $0x49] sm:$0x1]  ;;  %v290_v31 = vrot.slane %v241_v7, 6  ;;  %v293_v34 = vrot.slane %v242_v8, 5 }
  0x4c   : > { %v927_v26 = vsel %vm297_vm3, %v926_v6, %v925_v21  ;;  %v251_v29 = vld [vmem:[%s1298_s5 + $0x61] sm:$0x1]  ;;  %v289_v30 = vsel %vm288_vm0, %v287_v19, %v239_v1  ;;  %v252_v33 = vld [vmem:[%s1298_s5 + $0x79] sm:$0x1]  ;;  %v296_v35 = vrot.slane %v243_v12, 4  ;;  %v299_v36 = vrot.slane %v244_v13, 3 }
  0x4d   : > { %v929_v32 = vsel %vm300_vm4, %v928_v11, %v927_v26  ;;  %v253_v38 = vld [vmem:[%s1298_s5 + $0x91] sm:$0x1]  ;;  %v254_v39 = vld [vmem:[%s1298_s5 + $0xa9] sm:$0x1]  ;;  %v292_v40 = vsel %vm291_vm1, %v290_v31, %v289_v30  ;;  %v302_v41 = vrot.slane %v245_v17, 2  ;;  %v305_v42 = vrot.slane %v246_v18, 1 }
  0x4e   : > { %v931_v37 = vsel %vm303_vm5, %v930_v16, %v929_v32  ;;  %v295_v44 = vsel %vm294_vm2, %v293_v34, %v292_v40  ;;  %v317_v45 = vrot.slane %v248_v23, 7  ;;  %v319_v46 = vrot.slane %v249_v24, 6  ;;  %v436_v47 = vld [vmem:[%s1298_s5 + $0x5] sm:$0x1]  ;;  %v437_v48 = vld [vmem:[%s1298_s5 + $0x1d] sm:$0x1] }
  0x4f   : > { %v933_v43 = vsel %vm306_vm6, %v932_v22, %v931_v37  ;;  %v298_v50 = vsel %vm297_vm3, %v296_v35, %v295_v44  ;;  %v321_v51 = vrot.slane %v250_v28, 5  ;;  %v323_v52 = vrot.slane %v251_v29, 4  ;;  %v438_v53 = vld [vmem:[%s1298_s5 + $0x35] sm:$0x1]  ;;  %v439_v54 = vld [vmem:[%s1298_s5 + $0x4d] sm:$0x1] }
  0x50   : > { %v959_v49 = vpack.c.bf16 %v933_v43, %v910_v25  ;;  %v301_v55 = vsel %vm300_vm4, %v299_v36, %v298_v50  ;;  %v318_v56 = vsel %vm288_vm0, %v317_v45, %v247_v27  ;;  %v325_v57 = vrot.slane %v252_v33, 3  ;;  %v440_v58 = vld [vmem:[%s1298_s5 + $0x65] sm:$0x1]  ;;  %v441_v59 = vld [vmem:[%s1298_s5 + $0x7d] sm:$0x1] }
  0x51   : > { %v304_v60 = vsel %vm303_vm5, %v302_v41, %v301_v55  ;;  %v320_v61 = vsel %vm291_vm1, %v319_v46, %v318_v56  ;;  %v327_v62 = vrot.slane %v253_v38, 2  ;;  %v442_v63 = vld [vmem:[%s1298_s5 + $0x95] sm:$0x1]  ;;  %v443_v0 = vld [vmem:[%s1298_s5 + $0xad] sm:$0x1]  ;;  %v484_v1 = vrot.slane %v437_v48, 7 }
  0x52   : > { %970 = vmatpush.bf16.msra.mxu3 %v959_v49  ;;  %v307_v2 = vsel %vm306_vm6, %v305_v42, %v304_v60  ;;  %v322_v3 = vsel %vm294_vm2, %v321_v51, %v320_v61  ;;  %v329_v4 = vrot.slane %v254_v39, 1  ;;  %v444_v5 = vld [vmem:[%s1298_s5 + $0x6] sm:$0x1]  ;;  %v445_v6 = vld [vmem:[%s1298_s5 + $0x1e] sm:$0x1]  ;;  %v486_v12 = vrot.slane %v438_v53, 6 }
  0x53   : > { %v446_v7 = vld [vmem:[%s1298_s5 + $0x36] sm:$0x1]  ;;  %v324_v8 = vsel %vm297_vm3, %v323_v52, %v322_v3  ;;  %v447_v9 = vld [vmem:[%s1298_s5 + $0x4e] sm:$0x1]  ;;  %v448_v10 = vld [vmem:[%s1298_s5 + $0x66] sm:$0x1]  ;;  %v485_v11 = vsel %vm288_vm0, %v484_v1, %v436_v47 }
  0x54   : > { %v488_v13 = vrot.slane %v439_v54, 5  ;;  %v326_v14 = vsel %vm300_vm4, %v325_v57, %v324_v8  ;;  %v449_v15 = vld [vmem:[%s1298_s5 + $0x7e] sm:$0x1]  ;;  %v490_v16 = vrot.slane %v440_v58, 4  ;;  %v492_v17 = vrot.slane %v441_v59, 3 }
  0x55   : > { %v494_v18 = vrot.slane %v442_v63, 2  ;;  %v328_v19 = vsel %vm303_vm5, %v327_v62, %v326_v14  ;;  %v450_v20 = vld [vmem:[%s1298_s5 + $0x96] sm:$0x1]  ;;  %v451_v21 = vld [vmem:[%s1298_s5 + $0xae] sm:$0x1]  ;;  %v487_v22 = vsel %vm291_vm1, %v486_v12, %v485_v11  ;;  %v496_v23 = vrot.slane %v443_v0, 1 }
  0x56   : > { %v507_v24 = vrot.slane %v445_v6, 7  ;;  %v330_v25 = vsel %vm306_vm6, %v329_v4, %v328_v19  ;;  %v489_v26 = vsel %vm294_vm2, %v488_v13, %v487_v22  ;;  %v509_v27 = vrot.slane %v446_v7, 6  ;;  %v624_v29 = vld [vmem:[%s1298_s5 + $0xa] sm:$0x1]  ;;  %v625_v30 = vld [vmem:[%s1298_s5 + $0x22] sm:$0x1] }
  0x57   : > { %v511_v28 = vrot.slane %v447_v9, 5  ;;  %v401_v31 = vpack.c.bf16 %v330_v25, %v307_v2  ;;  %v491_v32 = vsel %vm297_vm3, %v490_v16, %v489_v26  ;;  %v513_v34 = vrot.slane %v448_v10, 4  ;;  %v626_v35 = vld [vmem:[%s1298_s5 + $0x3a] sm:$0x1]  ;;  %v627_v36 = vld [vmem:[%s1298_s5 + $0x52] sm:$0x1] }
  0x58   : > { %v508_v33 = vsel %vm288_vm0, %v507_v24, %v444_v5  ;;  %v493_v37 = vsel %vm300_vm4, %v492_v17, %v491_v32  ;;  %v515_v39 = vrot.slane %v449_v15, 3  ;;  %v517_v40 = vrot.slane %v450_v20, 2  ;;  %v628_v41 = vld [vmem:[%s1298_s5 + $0x6a] sm:$0x1]  ;;  %v629_v42 = vld [vmem:[%s1298_s5 + $0x82] sm:$0x1] }
  0x59   : > { %v510_v38 = vsel %vm291_vm1, %v509_v27, %v508_v33  ;;  %424 = vmatpush.bf16.msra.mxu0 %v401_v31  ;;  %v495_v43 = vsel %vm303_vm5, %v494_v18, %v493_v37  ;;  %v519_v45 = vrot.slane %v451_v21, 1  ;;  %v630_v46 = vld [vmem:[%s1298_s5 + $0x9a] sm:$0x1]  ;;  %v631_v47 = vld [vmem:[%s1298_s5 + $0xb2] sm:$0x1]  ;;  %v672_v48 = vrot.slane %v625_v30, 7 }
  0x5a   : > { %v512_v44 = vsel %vm294_vm2, %v511_v28, %v510_v38  ;;  %v497_v49 = vsel %vm306_vm6, %v496_v23, %v495_v43  ;;  %v632_v51 = vld [vmem:[%s1298_s5 + $0xb] sm:$0x1]  ;;  %v633_v52 = vld [vmem:[%s1298_s5 + $0x23] sm:$0x1]  ;;  %v634_v53 = vld [vmem:[%s1298_s5 + $0x3b] sm:$0x1] }
  0x5b   : > { %v514_v50 = vsel %vm297_vm3, %v513_v34, %v512_v44  ;;  %v635_v55 = vld [vmem:[%s1298_s5 + $0x53] sm:$0x1]  ;;  %v636_v56 = vld [vmem:[%s1298_s5 + $0x6b] sm:$0x1]  ;;  %v673_v57 = vsel %vm288_vm0, %v672_v48, %v624_v29  ;;  %v674_v58 = vrot.slane %v626_v35, 6  ;;  %v676_v59 = vrot.slane %v627_v36, 5 }
  0x5c   : > { %v516_v54 = vsel %vm300_vm4, %v515_v39, %v514_v50  ;;  %v637_v61 = vld [vmem:[%s1298_s5 + $0x83] sm:$0x1]  ;;  %v678_v62 = vrot.slane %v628_v41, 4  ;;  %v680_v63 = vrot.slane %v629_v42, 3  ;;  %v682_v0 = vrot.slane %v630_v46, 2 }
  0x5d   : > { %v518_v60 = vsel %vm303_vm5, %v517_v40, %v516_v54  ;;  %v638_v2 = vld [vmem:[%s1298_s5 + $0x9b] sm:$0x1]  ;;  %v675_v3 = vsel %vm291_vm1, %v674_v58, %v673_v57  ;;  %v684_v4 = vrot.slane %v631_v47, 1  ;;  %v695_v5 = vrot.slane %v633_v52, 7  ;;  %v639_v7 = vld [vmem:[%s1298_s5 + $0xb3] sm:$0x1] }
  0x5e   : > { %v520_v1 = vsel %vm306_vm6, %v519_v45, %v518_v60  ;;  %v677_v8 = vsel %vm294_vm2, %v676_v59, %v675_v3  ;;  %v697_v9 = vrot.slane %v634_v53, 6  ;;  %v699_v10 = vrot.slane %v635_v55, 5  ;;  %v803_v15 = vld [vmem:[%s1298_s5 + $0xf] sm:$0x1]  ;;  %v804_v16 = vld [vmem:[%s1298_s5 + $0x27] sm:$0x1] }
  0x5f   : > { %v591_v6 = vpack.c.bf16 %v520_v1, %v497_v49  ;;  %v679_v11 = vsel %vm297_vm3, %v678_v62, %v677_v8  ;;  %v696_v12 = vsel %vm288_vm0, %v695_v5, %v632_v51  ;;  %v701_v13 = vrot.slane %v636_v56, 4  ;;  %v805_v17 = vld [vmem:[%s1298_s5 + $0x3f] sm:$0x1]  ;;  %v806_v21 = vld [vmem:[%s1298_s5 + $0x57] sm:$0x1]  ;;  %v1102_v51 = vld [vmem:[%s1678_s2] sm:$0xff] }
  0x60   : > { %v703_v14 = vrot.slane %v637_v61, 3  ;;  %v681_v18 = vsel %vm300_vm4, %v680_v63, %v679_v11  ;;  %v698_v19 = vsel %vm291_vm1, %v697_v9, %v696_v12  ;;  %v705_v20 = vrot.slane %v638_v2, 2  ;;  %v807_v22 = vld [vmem:[%s1298_s5 + $0x6f] sm:$0x1]  ;;  %v808_v26 = vld [vmem:[%s1298_s5 + $0x87] sm:$0x1]  ;;  %1092 = vmatmul.msk.bf16.vlgmr.msra.gmra.mxu0 %vm409_vm8, %v1102_v51 }
  0x61   : > { %604 = vmatpush.bf16.msra.mxu1 %v591_v6  ;;  %v683_v23 = vsel %vm303_vm5, %v682_v0, %v681_v18  ;;  %v700_v24 = vsel %vm294_vm2, %v699_v10, %v698_v19  ;;  %v707_v25 = vrot.slane %v639_v7, 1  ;;  %v809_v27 = vld [vmem:[%s1298_s5 + $0x9f] sm:$0x1]  ;;  %v810_v29 = vld [vmem:[%s1298_s5 + $0xb7] sm:$0x1]  ;;  %v851_v32 = vrot.slane %v804_v16, 7 }
  0x62   : > { %v702_v28 = vsel %vm297_vm3, %v701_v13, %v700_v24  ;;  %v812_v30 = vld [vmem:[%s1298_s5 + $0x28] sm:$0x1]  ;;  %v813_v31 = vld [vmem:[%s1298_s5 + $0x40] sm:$0x1]  ;;  %v853_v33 = vrot.slane %v805_v17, 6  ;;  %v685_v34 = vsel %vm306_vm6, %v684_v4, %v683_v23  ;;  %v855_v38 = vrot.slane %v806_v21, 5 }
  0x63   : > { %v704_v35 = vsel %vm300_vm4, %v703_v14, %v702_v28  ;;  %v814_v36 = vld [vmem:[%s1298_s5 + $0x58] sm:$0x1]  ;;  %v815_v37 = vld [vmem:[%s1298_s5 + $0x70] sm:$0x1]  ;;  %v857_v39 = vrot.slane %v807_v22, 4  ;;  %v852_v43 = vsel %vm288_vm0, %v851_v32, %v803_v15  ;;  %v859_v44 = vrot.slane %v808_v26, 3 }
  0x64   : > { %v706_v40 = vsel %vm303_vm5, %v705_v20, %v704_v35  ;;  %v811_v41 = vld [vmem:[%s1298_s5 + $0x10] sm:$0x1]  ;;  %v816_v42 = vld [vmem:[%s1298_s5 + $0x88] sm:$0x1]  ;;  %v861_v45 = vrot.slane %v809_v27, 2  ;;  %v854_v48 = vsel %vm291_vm1, %v853_v33, %v852_v43  ;;  %v874_v49 = vrot.slane %v812_v30, 7  ;;  %1093 = vmatmul.msk.bf16.vlgmr.msra.gmra.mxu1 %vm409_vm8, %v1102_v51 }
  0x65   : > { %v708_v46 = vsel %vm306_vm6, %v707_v25, %v706_v40  ;;  %v817_v47 = vld [vmem:[%s1298_s5 + $0xa0] sm:$0x1]  ;;  %v876_v50 = vrot.slane %v813_v31, 6  ;;  %v818_v53 = vld [vmem:[%s1298_s5 + $0xb8] sm:$0x1]  ;;  %v856_v54 = vsel %vm294_vm2, %v855_v38, %v854_v48  ;;  %v878_v55 = vrot.slane %v814_v36, 5 }
  0x66   : > { %v779_v52 = vpack.c.bf16 %v708_v46, %v685_v34  ;;  %v880_v56 = vrot.slane %v815_v37, 4  ;;  %v858_v57 = vsel %vm297_vm3, %v857_v39, %v856_v54  ;;  %v863_v58 = vrot.slane %v810_v29, 1  ;;  %v227_v0 = vld [vmem:[%s1679_s3] sm:$0xff]  ;;  %v228_v11 = vld [vmem:[%s1679_s3 + $0x8] sm:$0xff]  ;;  %v219_v40 = vld [vmem:[%s210_s29 + $0x10] sm:$0xff] }
  0x67   : > { %v875_v59 = vsel %vm288_vm0, %v874_v49, %v811_v41  ;;  %v882_v60 = vrot.slane %v816_v42, 3  ;;  %v860_v61 = vsel %vm300_vm4, %v859_v44, %v858_v57  ;;  %v884_v63 = vrot.slane %v817_v47, 2  ;;  %v217_v38 = vld [vmem:[%s210_s29] sm:$0xff]  ;;  %v218_v39 = vld [vmem:[%s210_s29 + $0x8] sm:$0xff]  ;;  %v220_v41 = vld [vmem:[%s210_s29 + $0x18] sm:$0xff]  ;;  %223 = vst [vmem:[%s1620_s14 + $0x10] sm:$0xff] %v219_v40 }
  0x68   : > { %792 = vmatpush.bf16.msra.mxu2 %v779_v52  ;;  %v877_v62 = vsel %vm291_vm1, %v876_v50, %v875_v59  ;;  %v862_v1 = vsel %vm303_vm5, %v861_v45, %v860_v61  ;;  %v886_v3 = vrot.slane %v818_v53, 1  ;;  %v1213_v5 = vmov 0   ;;  %221 = vst [vmem:[%s1620_s14] sm:$0xff] %v217_v38 }
  0x69   : > { %v879_v2 = vsel %vm294_vm2, %v878_v55, %v877_v62  ;;  %1148 = vset.pattern.permute.xlu0 %v1213_v5  ;;  %v864_v6 = vsel %vm306_vm6, %v863_v58, %v862_v1  ;;  %222 = vst [vmem:[%s1620_s14 + $0x8] sm:$0xff] %v218_v39 }
  0x6a   : > { %v881_v4 = vsel %vm297_vm3, %v880_v56, %v879_v2  ;;  %231 = vperm.xlu0 %1148, %v227_v0   ;;  %224 = vst [vmem:[%s1620_s14 + $0x18] sm:$0xff] %v220_v41 }
  0x6b   : > { %v883_v7 = vsel %vm300_vm4, %v882_v60, %v881_v4  ;;  %1094 = vmatmul.msk.bf16.vlgmr.msra.gmra.mxu2 %vm409_vm8, %v1102_v51 }
  0x6c   : > { %v885_v8 = vsel %vm303_vm5, %v884_v63, %v883_v7 }
  0x6d   : > { %v887_v9 = vsel %vm306_vm6, %v886_v3, %v885_v8 }
  0x6e   : > { %v958_v10 = vpack.c.bf16 %v887_v9, %v864_v6 }
  0x70   : > { %971 = vmatpush.bf16.msra.mxu3 %v958_v10 }
  0x72   : > { %236 = vperm.xlu0 %1148, %v228_v11  }
  0x73   : > { %1095 = vmatmul.msk.bf16.vlgmr.msra.gmra.mxu3 %vm409_vm8, %v1102_v51 }
  0xdc   : > { %v232_v12 = vpop.permute.xlu0 %231 }
  0xdd   : > { %v426_v13 = vpop.f32.mrf.mxu0 }
  0xde   : > { %v427_v15 = vadd.f32 %v426_v13, %v232_v12 }
  0xe0   : > { %v431_v17 = vmax.f32 %v427_v15, 0.0 }
  0xe1   : > { %v606_v14 = vpop.f32.mrf.mxu1 }
  0xe2   : > { %v607_v16 = vadd.f32 %v606_v14, %v232_v12  ;;  %434 = vst.msk [vmem:[%s1620_s14 + $0x20] sm:$0xff] %vm433_vm9, %v431_v17 }
  0xe4   : > { %v611_v18 = vmax.f32 %v607_v16, 0.0  ;;  %v237_v19 = vpop.permute.xlu0 %236 }
  0xe5   : > { %v428_v21 = vpop.f32.mrf.mxu0 }
  0xe6   : > { %615 = vrot.lane.b32.xlu1 %v611_v18, %s1214_s20  ;;  %v429_v23 = vadd.f32 %v428_v21, %v237_v19 }
  0xe8   : > { %v432_v27 = vmax.f32 %v429_v23, 0.0 }
  0xe9   : > { %v608_v24 = vpop.f32.mrf.mxu1 }
  0xea   : > { %v609_v25 = vadd.f32 %v608_v24, %v237_v19  ;;  %435 = vst.msk [vmem:[%s1620_s14 + $0x30] sm:$0xff] %vm433_vm9, %v432_v27 }
  0xec   : > { %v612_v28 = vmax.f32 %v609_v25, 0.0 }
  0xee   : > { %v794_v20 = vpop.f32.mrf.mxu2  ;;  %617 = vrot.lane.b32.xlu1 %v612_v28, %s1214_s20 }
  0xef   : > { %v795_v22 = vadd.f32 %v794_v20, %v232_v12 }
  0xf1   : > { %v799_v26 = vmax.f32 %v795_v22, 0.0 }
  0xf3   : > { %801 = vst.msk [vmem:[%s1620_s14 + $0x28] sm:$0xff] %vm433_vm9, %v799_v26 }
  0xf6   : > { %v973_v29 = vpop.f32.mrf.mxu3  ;;  %v796_v30 = vpop.f32.mrf.mxu2 }
  0xf7   : > { %v974_v31 = vadd.f32 %v973_v29, %v232_v12  ;;  %v797_v32 = vadd.f32 %v796_v30, %v237_v19 }
  0xf9   : > { %v978_v33 = vmax.f32 %v974_v31, 0.0  ;;  %v800_v34 = vmax.f32 %v797_v32, 0.0 }
  0xfb   : > { %982 = vrot.lane.b32.xlu2 %v978_v33, %s1214_s20  ;;  %802 = vst.msk [vmem:[%s1620_s14 + $0x38] sm:$0xff] %vm433_vm9, %v800_v34 }
  0xfe   : > { %v975_v35 = vpop.f32.mrf.mxu3 }
  0xff   : > { %v976_v36 = vadd.f32 %v975_v35, %v237_v19 }
 0x101   : > { %v979_v37 = vmax.f32 %v976_v36, 0.0 }
 0x103   : > { %984 = vrot.lane.b32.xlu2 %v979_v37, %s1214_s20  ;;  %s1169_s20 = scalar_lea.hbm %s1680_s4, 128 }
 0x104   : > { %p1171_p1 = scmp.lt.s32.totalorder %s1169_s20, %s1165_s19 }
 0x106   : > { %p1172_p2 = por %p1171_p1, %p1170_p0 }
 0x108   : > { %p1173_p3 = pnand %p1172_p2, %p1168_p13 }
 0x155   : > { %v983_v42 = vpop.permute.xlu2 %982 }
 0x156   : > { %988 = vst.msk [vmem:[%s1620_s14 + $0x28] sm:$0xff] %vm621_vm10, %v983_v42 }
 0x158   : > { %v616_v44 = vpop.permute.xlu1 %615 }
 0x159   : > { %622 = vst.msk [vmem:[%s1620_s14 + $0x20] sm:$0xff] %vm621_vm10, %v616_v44 }
 0x15d   : > { %v985_v43 = vpop.permute.xlu2 %984 }
 0x15e   : > { %989 = vst.msk [vmem:[%s1620_s14 + $0x38] sm:$0xff] %vm621_vm10, %v985_v43 }
 0x160   : > { %v618_v45 = vpop.permute.xlu1 %617 }
 0x161   : > { %623 = vst.msk [vmem:[%s1620_s14 + $0x30] sm:$0xff] %vm621_vm10, %v618_v45 }
 0x162   : > { %1176 = shalt.err (!%p1173_p3)
}
 0x163   : > { %s1215_s12 = smov 256   ;;  %s1216_s14 = smov 16  }
 0x164   : > { %1105 = dma.vmem_to_hbm [thread:$0]  (%p1280_p5), %s1004_s7, 1024, %s1006_s8, %s991_s9, %s1215_s12, %s1215_s12, %s1216_s14  }
 0x165 PF: > { %p1111_p4 = scmp.ge.s32.totalorder %s1211_s18, 2  ;;  %s1020_s28 = sand.u32 1, %s1199_s15  }
 0x166   : > { %s1021_s29 = scalar_lea.sflag [#allocation3], %s1020_s28 }
 0x167   : > { %p1108_p7 = pnand %p1111_p4, %p1284_p6 }
 0x169   : > { %p1109_p8 = pneg %p1108_p7 }
 0x16b   : > { %1194 = dma.done.wait (%p1109_p8), %s1021_s29, 1024  }
 0x16c   : > { %1196 = vsyncadd (%p1109_p8), %s1021_s29, 4294966272  ;;  %p14_p9 = scmp.ge.s32.totalorder %s1267_s21, 4   ;;  %s1683_s15 = smov %s1203_s16 }
 0x16d   : > { %s1684_s16 = smov %s1207_s17  ;;  %s1685_s17 = smov %s1278_s24 }
 0x16e   : > { %s1686_s18 = smov %s1267_s21  ;;  %16 = sbr.rel (!%p14_p9) target bundleno = 3 (0x3), region = 74 }
 0x173   :  { %1027 = vsyncpa [#allocation3], 1 }
 0x174   :  { %1029 = vsyncpa [#allocation3 + $0x1], 1 }

</bundles_post_ra>
